<compile_context>
chip_gen: v7x
topology: tpu7x:2x2x1
jax: 0.10.0
libtpu: 0.0.40
codegen_flags: <defaults>
</compile_context>

<pallas_src>
import jax
import jax.numpy as jnp
from jax.experimental import pallas as pl
from jax.experimental.pallas import tpu as pltpu


# ---------------------------------------------------------------------------
# Pallas kernel: fused (stem conv -> BN -> ReLU) -> (1x1 conv -> BN -> ReLU)
# Channel-first matmuls: the pixel tile is the lane axis.
# ---------------------------------------------------------------------------
def _fused_stem_reduce_kernel(x_ref, w1_ref, b1_ref, w2_ref, b2_ref, o_ref):
    # x_ref:  (K1, tm)  bf16   im2col patches (channel-first), pixel tile on lanes
    # w1_ref: (C1, K1)  bf16   stem weight  (BN scale folded in)
    # b1_ref: (C1, 1)   f32    stem shift
    # w2_ref: (C2, C1)  bf16   reduce weight (BN scale folded in)
    # b2_ref: (C2, 1)   f32    reduce shift
    # o_ref:  (C2, tm)  bf16 (or f32)
    y1 = jnp.dot(w1_ref[...], x_ref[...], preferred_element_type=jnp.float32)   # (C1, tm)
    y1 = jnp.maximum(y1 + b1_ref[...], 0.0)
    y1 = y1.astype(w2_ref.dtype)                                                # bf16 for 2nd MXU pass
    y2 = jnp.dot(w2_ref[...], y1, preferred_element_type=jnp.float32)           # (C2, tm)
    y2 = jnp.maximum(y2 + b2_ref[...], 0.0)
    o_ref[...] = y2.astype(o_ref.dtype)


def _round_up(x, m):
    return ((x + m - 1) // m) * m


def _choose_pixel_tile(p, max_tile=8192):
    """Pick a lane-dense pixel tile: multiple of 128, capped at max_tile."""
    p128 = _round_up(max(p, 1), 128)
    return p128 if p128 <= max_tile else max_tile


def fused_pyramid_forward(cols, w1t, b1, w2t, b2, out_dtype=jnp.bfloat16):
    """cols: (K1, P_pad) bf16 (P_pad a multiple of the pixel tile);
    w1t: (C1, K1) bf16; b1: (C1, 1) f32; w2t: (C2, C1) bf16; b2: (C2, 1) f32.
    Returns (C2, P_pad) in out_dtype."""
    K1, P_pad = cols.shape
    C1 = w1t.shape[0]
    C2 = w2t.shape[0]
    tm = _choose_pixel_tile(P_pad)
    assert P_pad % tm == 0, "caller must pad the pixel axis to a tile multiple"
    num_tiles = P_pad // tm
    out_bytes = jnp.dtype(out_dtype).itemsize

    cost = pl.CostEstimate(
        flops=2 * P_pad * (C1 * K1 + C2 * C1),
        transcendentals=0,
        bytes_accessed=(K1 * P_pad * 2              # bf16 patches in
                        + C2 * P_pad * out_bytes    # output
                        + (C1 * K1 + C2 * C1) * 2 + (C1 + C2) * 4),
    )

    return pl.pallas_call(
        _fused_stem_reduce_kernel,
        out_shape=jax.ShapeDtypeStruct((C2, P_pad), out_dtype),
        grid=(num_tiles,),
        in_specs=[
            pl.BlockSpec((K1, tm), lambda j: (0, j)),   # pixel tile of patches
            pl.BlockSpec((C1, K1), lambda j: (0, 0)),   # stem weight (VMEM resident)
            pl.BlockSpec((C1, 1), lambda j: (0, 0)),    # stem shift
            pl.BlockSpec((C2, C1), lambda j: (0, 0)),   # reduce weight (VMEM resident)
            pl.BlockSpec((C2, 1), lambda j: (0, 0)),    # reduce shift
        ],
        out_specs=pl.BlockSpec((C2, tm), lambda j: (0, j)),
        compiler_params=pltpu.CompilerParams(dimension_semantics=("parallel",)),
        cost_estimate=cost,
    )(cols, w1t, b1, w2t, b2)


# ---------------------------------------------------------------------------
# Glue: channel-first im2col with a flat (N*Ho*Wo) pixel axis, BN folding
# ---------------------------------------------------------------------------
def _im2col_flat(x_nchw, ksize, stride, padding):
    """(N, C, H, W) -> (C*K*K, N*Ho*Wo) with PyTorch (cin, kh, kw) row order
    and n-major, row-major pixel column order."""
    N, C, H, W = x_nchw.shape
    xp = jnp.pad(x_nchw, ((0, 0), (0, 0), (padding, padding), (padding, padding)))
    Ho = (H + 2 * padding - ksize) // stride + 1
    Wo = (W + 2 * padding - ksize) // stride + 1
    patches = []
    for dy in range(ksize):
        for dx in range(ksize):
            patches.append(xp[:, :, dy:dy + stride * Ho:stride, dx:dx + stride * Wo:stride])
    p = jnp.stack(patches, axis=2)                 # (N, C, K*K, Ho, Wo)
    p = p.transpose(1, 2, 0, 3, 4)                 # (C, K*K, N, Ho, Wo)
    cols = p.reshape(C * ksize * ksize, N * Ho * Wo)
    return cols, Ho, Wo


def fold_bn(gamma, beta, running_mean, running_var, eps=1e-5):
    scale = gamma / jnp.sqrt(running_var + eps)
    shift = beta - running_mean * scale
    return scale, shift


# ---------------------------------------------------------------------------
# PyramidFeat2D (JAX / Pallas version)
# ---------------------------------------------------------------------------
class PyramidFeat2DPallas:
    def __init__(self, key, compute_dtype=jnp.bfloat16, out_dtype=jnp.bfloat16):
        # synthetic config mirroring model_cfg:
        #   feat_extract_layer = ['layer1']
        #   channel_reduce: in_channels=[32], out_channels=[16],
        #                   kernel_size=[1], stride=[1], bias=[False]
        self.feat_extract_layer = ["layer1"]
        self.out_channels = {"layer1": 16}
        cin_img, cin_feat, cout_feat = 3, 32, 16
        ks = 3

        k = jax.random.split(key, 6)
        # --- IFN stand-in (SemDeepLabV3 'layer1'): 3x3 conv, stride 2, identity BN ---
        stem_w = 0.1 * jax.random.normal(k[0], (cin_feat, cin_img, ks, ks), jnp.float32)
        stem_scale = jnp.ones((cin_feat,), jnp.float32)
        stem_shift = jnp.zeros((cin_feat,), jnp.float32)

        # --- BasicBlock2D: 1x1 Conv(bias=False) + BatchNorm2d (running stats) + ReLU ---
        red_w = 0.1 * jax.random.normal(k[1], (cout_feat, cin_feat, 1, 1), jnp.float32)
        gamma = 1.0 + 0.05 * jax.random.normal(k[2], (cout_feat,), jnp.float32)
        beta = 0.05 * jax.random.normal(k[3], (cout_feat,), jnp.float32)
        running_mean = 0.05 * jax.random.normal(k[4], (cout_feat,), jnp.float32)
        running_var = jnp.abs(1.0 + 0.05 * jax.random.normal(k[5], (cout_feat,), jnp.float32))
        red_scale, red_shift = fold_bn(gamma, beta, running_mean, running_var)

        # Fold BN scale into the weight rows; pad K (27) to a multiple of 16
        # (bf16 sublane packing) -> 32.  Zero weight columns match the zero rows
        # appended to the im2col patches.
        self.ksize, self.stride, self.padding = ks, 2, 1
        self.k_raw = cin_img * ks * ks
        self.k_pad = _round_up(self.k_raw, 16)
        w1 = stem_w.reshape(cin_feat, self.k_raw) * stem_scale[:, None]
        w1 = jnp.pad(w1, ((0, 0), (0, self.k_pad - self.k_raw)))
        self.w1t = w1.astype(compute_dtype)                      # (C1, Kpad)
        self.b1 = stem_shift[:, None].astype(jnp.float32)        # (C1, 1)

        w2 = red_w.reshape(cout_feat, cin_feat) * red_scale[:, None]
        self.w2t = w2.astype(compute_dtype)                      # (C2, C1)
        self.b2 = red_shift[:, None].astype(jnp.float32)         # (C2, 1)
        self.compute_dtype = compute_dtype
        self.out_dtype = out_dtype

    def get_output_feature_dim(self):
        return self.out_channels

    def __call__(self, images):
        """images: (N, 3, H, W) NCHW f32 -> dict of '<layer>_feat2d' NCHW features."""
        N = images.shape[0]
        # im2col for the stem, flat pixel axis (channel-first, pixels on lanes)
        cols, Ho, Wo = _im2col_flat(images, self.ksize, self.stride, self.padding)
        p_real = N * Ho * Wo
        tm = _choose_pixel_tile(p_real)
        p_pad = _round_up(p_real, tm)
        cols = jnp.pad(cols, ((0, self.k_pad - self.k_raw), (0, p_pad - p_real)))
        cols = cols.astype(self.compute_dtype)                   # (Kpad, Ppad)

        batch_dict = {}
        for _idx, _layer in enumerate(self.feat_extract_layer):
            # fused: stem conv+BN+ReLU  ->  1x1 reduce conv+BN+ReLU  (one kernel)
            out = fused_pyramid_forward(cols, self.w1t, self.b1, self.w2t, self.b2,
                                        out_dtype=self.out_dtype)   # (C2, Ppad)
            c_out = self.out_channels[_layer]
            feat = out[:, :p_real].reshape(c_out, N, Ho, Wo).transpose(1, 0, 2, 3)
            batch_dict[_layer + "_feat2d"] = feat
        # (training-mode detach_ of logits / features is a value no-op)
        return batch_dict


if __name__ == "__main__":
    key = jax.random.PRNGKey(0)
    k_img, k_par = jax.random.split(key)
    images = jax.random.normal(k_img, (2, 3, 16, 16), jnp.float32)   # (N, 3, H, W)

    model = PyramidFeat2DPallas(k_par)
    out = model(images)
    feat = out["layer1_feat2d"]
    jax.block_until_ready(feat)

    assert feat.shape == (2, 16, 8, 8), feat.shape
    assert bool(jnp.all(feat >= 0.0))          # ReLU output
    assert bool(jnp.all(jnp.isfinite(feat.astype(jnp.float32))))
    print("KERNEL_OK")
</pallas_src>

<mosaic_0001>
module attributes {stable_mosaic.version = 11 : i64} {
  func.func @_fused_stem_reduce_kernel(%arg0: i32, %arg1: memref<32x128xbf16, #tpu.memory_space<vmem>>, %arg2: memref<32x32xbf16, #tpu.memory_space<vmem>>, %arg3: memref<32x1xf32, #tpu.memory_space<vmem>>, %arg4: memref<16x32xbf16, #tpu.memory_space<vmem>>, %arg5: memref<16x1xf32, #tpu.memory_space<vmem>>, %arg6: memref<16x128xbf16, #tpu.memory_space<vmem>>) attributes {dimension_semantics = [#tpu.dimension_semantics<parallel>], iteration_bounds = array<i64: 1>, scalar_prefetch = 0 : i64, scratch_operands = 0 : i64, tpu.core_type = #tpu.core_type<tc>, window_params = [{transform_indices = @transform_0, window_bounds = array<i64: 32, 128>}, {pipeline_mode = #tpu.pipeline_mode<synchronous>, transform_indices = @transform_1, window_bounds = array<i64: 32, 32>}, {pipeline_mode = #tpu.pipeline_mode<synchronous>, transform_indices = @transform_2, window_bounds = array<i64: 32, 1>}, {pipeline_mode = #tpu.pipeline_mode<synchronous>, transform_indices = @transform_3, window_bounds = array<i64: 16, 32>}, {pipeline_mode = #tpu.pipeline_mode<synchronous>, transform_indices = @transform_4, window_bounds = array<i64: 16, 1>}, {transform_indices = @transform_5, window_bounds = array<i64: 16, 128>}]} {
    %c0 = arith.constant 0 : index
    %c0_0 = arith.constant 0 : index
    %0 = vector.load %arg2[%c0, %c0_0] : memref<32x32xbf16, #tpu.memory_space<vmem>>, vector<32x32xbf16>
    %c0_1 = arith.constant 0 : index
    %c0_2 = arith.constant 0 : index
    %1 = vector.load %arg1[%c0_1, %c0_2] : memref<32x128xbf16, #tpu.memory_space<vmem>>, vector<32x128xbf16>
    %cst = arith.constant dense<0.000000e+00> : vector<32x128xf32>
    %2 = tpu.matmul %0, %1, %cst {dimension_numbers = #tpu.dot_dimension_numbers<[1], [0], [0], [1], [0, 0, 1, 1], [], []>} : vector<32x32xbf16>, vector<32x128xbf16>, vector<32x128xf32> -> vector<32x128xf32>
    %c0_3 = arith.constant 0 : index
    %c0_4 = arith.constant 0 : index
    %3 = vector.load %arg3[%c0_3, %c0_4] : memref<32x1xf32, #tpu.memory_space<vmem>>, vector<32x1xf32>
    %4 = vector.broadcast %3 : vector<32x1xf32> to vector<32x128xf32>
    %5 = arith.addf %2, %4 : vector<32x128xf32>
    %cst_5 = arith.constant 0.000000e+00 : f32
    %6 = vector.broadcast %cst_5 : f32 to vector<32x128xf32>
    %7 = arith.maximumf %5, %6 : vector<32x128xf32>
    %8 = arith.truncf %7 : vector<32x128xf32> to vector<32x128xbf16>
    %c0_6 = arith.constant 0 : index
    %c0_7 = arith.constant 0 : index
    %9 = vector.load %arg4[%c0_6, %c0_7] : memref<16x32xbf16, #tpu.memory_space<vmem>>, vector<16x32xbf16>
    %cst_8 = arith.constant dense<0.000000e+00> : vector<16x128xf32>
    %10 = tpu.matmul %9, %8, %cst_8 {dimension_numbers = #tpu.dot_dimension_numbers<[1], [0], [0], [1], [0, 0, 1, 1], [], []>} : vector<16x32xbf16>, vector<32x128xbf16>, vector<16x128xf32> -> vector<16x128xf32>
    %c0_9 = arith.constant 0 : index
    %c0_10 = arith.constant 0 : index
    %11 = vector.load %arg5[%c0_9, %c0_10] : memref<16x1xf32, #tpu.memory_space<vmem>>, vector<16x1xf32>
    %12 = vector.broadcast %11 : vector<16x1xf32> to vector<16x128xf32>
    %13 = arith.addf %10, %12 : vector<16x128xf32>
    %cst_11 = arith.constant 0.000000e+00 : f32
    %14 = vector.broadcast %cst_11 : f32 to vector<16x128xf32>
    %15 = arith.maximumf %13, %14 : vector<16x128xf32>
    %16 = arith.truncf %15 : vector<16x128xf32> to vector<16x128xbf16>
    %c0_12 = arith.constant 0 : index
    %c0_13 = arith.constant 0 : index
    %17 = vector.load %arg6[%c0_12, %c0_13] : memref<16x128xbf16, #tpu.memory_space<vmem>>, vector<16x128xbf16>
    tpu.vector_store %arg6[%c0_12, %c0_13], %16 {strides = array<i32>} : memref<16x128xbf16, #tpu.memory_space<vmem>>, vector<16x128xbf16>,
    return
  }
  func.func @transform_0(%arg0: i32) -> (i32, i32) {
    %c0_i32 = arith.constant 0 : i32
    %c0_i32_0 = arith.constant 0 : i32
    return %c0_i32, %arg0 : i32, i32
  }
  func.func @transform_1(%arg0: i32) -> (i32, i32) {
    %c0_i32 = arith.constant 0 : i32
    %c0_i32_0 = arith.constant 0 : i32
    %c0_i32_1 = arith.constant 0 : i32
    return %c0_i32, %c0_i32_0 : i32, i32
  }
  func.func @transform_2(%arg0: i32) -> (i32, i32) {
    %c0_i32 = arith.constant 0 : i32
    %c0_i32_0 = arith.constant 0 : i32
    %c0_i32_1 = arith.constant 0 : i32
    return %c0_i32, %c0_i32_0 : i32, i32
  }
  func.func @transform_3(%arg0: i32) -> (i32, i32) {
    %c0_i32 = arith.constant 0 : i32
    %c0_i32_0 = arith.constant 0 : i32
    %c0_i32_1 = arith.constant 0 : i32
    return %c0_i32, %c0_i32_0 : i32, i32
  }
  func.func @transform_4(%arg0: i32) -> (i32, i32) {
    %c0_i32 = arith.constant 0 : i32
    %c0_i32_0 = arith.constant 0 : i32
    %c0_i32_1 = arith.constant 0 : i32
    return %c0_i32, %c0_i32_0 : i32, i32
  }
  func.func @transform_5(%arg0: i32) -> (i32, i32) {
    %c0_i32 = arith.constant 0 : i32
    %c0_i32_0 = arith.constant 0 : i32
    return %c0_i32, %arg0 : i32, i32
  }
}

</mosaic_0001>

<bundles_post_ra>
// kernel: tpu_custom_call.1
= control target key start
LH: loop header
LB: loop body
LE: loop exit
PB: predicated region body
PF: predicated region fallthrough
CT: control target
= control target key end

     0   :  { %vm76_vm0 = vcmask 261120   ;;  %v306_v3 = vmov 0   ;;  %s390_s0 = inlined_call_operand.vmem [shape: bf16[32,128], index: 0, kind: input, shape index: {}]   ;;  %s391_s1 = inlined_call_operand.vmem [shape: bf16[32,32], index: 1, kind: input, shape index: {}]   ;;  %s392_s2 = inlined_call_operand.vmem [shape: f32[32,1], index: 2, kind: input, shape index: {}]   ;;  %s393_s3 = inlined_call_operand.vmem [shape: bf16[16,32], index: 3, kind: input, shape index: {}]   ;;  %s394_s4 = inlined_call_operand.vmem [shape: f32[16,1], index: 4, kind: input, shape index: {}]   ;;  %s395_s5 = inlined_call_operand.hbm [shape: bf16[16,128], index: 5, kind: output, shape index: {}]  }
   0x1   :  { %v277_v0 = vld [vmem:[%s390_s0] sm:$0xff]   ;;  %v278_v1 = vld [vmem:[%s390_s0 + $0x8] sm:$0xff]   ;;  %275 = vset.pattern.permute.xlu0 %v306_v3  ;;  %276 = vset.pattern.permute.xlu1 %v306_v3  ;;  %v32_v5 = vld [vmem:[%s392_s2 + $0x10] sm:$0xff] }
   0x2   :  { %253 = vmatprep.subr.bf16.mxu0 %v277_v0  ;;  %v279_v2 = vld [vmem:[%s391_s1] sm:$0xff]   ;;  %v280_v6 = vld [vmem:[%s391_s1 + $0x8] sm:$0xff]   ;;  %46 = vperm.xlu1 %276, %v32_v5   ;;  %v33_v8 = vld [vmem:[%s392_s2 + $0x18] sm:$0xff] }
   0x3   :  { %254 = vmatpush3.bf16.msra.mxu0 %v277_v0  ;;  %257 = vmatprep.mubr.msk.bf16.mxu0 %vm76_vm0, %v279_v2  ;;  %v30_v4 = vld [vmem:[%s392_s2] sm:$0xff]  ;;  %v31_v7 = vld [vmem:[%s392_s2 + $0x8] sm:$0xff] }
   0x4   :  { %255 = vmatprep.subr.bf16.mxu0 %v278_v1  ;;  %36 = vperm.xlu0 %275, %v30_v4  }
   0x5   :  { %10 = vsyncpa [#allocation3], 0  ;;  %v140_v9 = vld [vmem:[%s394_s4] sm:$0xff]  ;;  %v141_v10 = vld [vmem:[%s394_s4 + $0x8] sm:$0xff]  ;;  %v307_v11 = vmov 0.0   ;;  %vm308_vm1 = vmmov 0  }
   0x6   :  { %51 = vperm.xlu1 %276, %v33_v8   ;;  %261 = vmatprep.subr.bf16.mxu1 %v307_v11  ;;  %v281_v30 = vld [vmem:[%s393_s3] sm:$0xff]   ;;  %s309_s11 = smov [#allocation2]  }
   0x7   :  { %256 = vmatpush3.bf16.msra.mxu0 %v278_v1  ;;  %265 = vmatprep.mubr.msk.bf16.mxu1 %vm308_vm1, %v307_v11  ;;  %s218_s12 = sshll.u32 %s309_s11, 4  ;;  %s219_s12 = int_to_ptr.vmem [resolvable:$true] %s218_s12 }
   0x8   :  { %41 = vperm.xlu0 %275, %v31_v7   ;;  %s282_s13 = scalar_lea.vmem %s219_s12, 128  ;;  %p287_p1 = scmp.lt.s32.totalorder %s219_s12, %s219_s12 }
   0x9   :  { %p283_p0 = scmp.ne.s32.totalorder %s219_s12, %s282_s13  ;;  %p288_p2 = scmp.lt.s32.totalorder %s282_s13, %s282_s13 }
   0xa   :  { %258 = vmatmul.mubr.msk.bf16.vlgmr.msra.gmra.mrb[0].mxu0 %vm76_vm0, %v280_v6  ;;  %149 = vperm.xlu1 %276, %v141_v10  }
   0xb   :  { %p289_p3 = por %p288_p2, %p287_p1 }
   0xc   :  { %144 = vperm.xlu0 %275, %v140_v9  }
   0xd   :  { %p290_p4 = pnand %p289_p3, %p283_p0 }
  0x81   :  { %v47_v12 = vpop.permute.xlu1 %46 }
  0x83   :  { %v37_v13 = vpop.permute.xlu0 %36 }
  0x85   :  { %v52_v17 = vpop.permute.xlu1 %51 }
  0x87   :  { %v42_v20 = vpop.permute.xlu0 %41 }
  0x89   :  { %v150_v35 = vpop.permute.xlu1 %149 }
  0x8b   :  { %v145_v31 = vpop.permute.xlu0 %144 }
  0xdd   :  { %v259_v14 = vpop.f32.mrb[0].mxu0 }
  0xde   :  { %v126_v15 = vadd.f32 %v259_v14, %v47_v12  ;;  %v117_v16 = vpop.f32.mrb[1].mxu0 }
  0xdf   :  { %v118_v18 = vadd.f32 %v117_v16, %v37_v13  ;;  %v260_v19 = vpop.f32.mrb[2].mxu0 }
  0xe0   :  { %v129_v21 = vadd.f32 %v260_v19, %v52_v17  ;;  %v120_v22 = vpop.f32.mrb[3].mxu0  ;;  %v134_v24 = vmax.f32 %v126_v15, 0.0 }
  0xe1   :  { %v121_v23 = vadd.f32 %v120_v22, %v42_v20  ;;  %v132_v26 = vmax.f32 %v118_v18, 0.0 }
  0xe2   :  { %v135_v25 = vmax.f32 %v129_v21, 0.0 }
  0xe3   :  { %v133_v27 = vmax.f32 %v121_v23, 0.0 }
  0xe4   :  { %v137_v28 = vpack.c.bf16 %v135_v25, %v134_v24 }
  0xe5   :  { %v136_v29 = vpack.c.bf16 %v133_v27, %v132_v26 }
  0xe7   :  { %262 = vmatpush3.bf16.msra.mxu1 %v136_v29 }
  0xe8   :  { %263 = vmatprep.subr.bf16.mxu1 %v307_v11 }
  0xeb   :  { %264 = vmatpush3.bf16.msra.mxu1 %v137_v28 }
  0xee   :  { %266 = vmatmul.mubr.msk.bf16.vlgmr.msra.gmra.mrb[0].mxu1 %vm76_vm0, %v281_v30 }
 0x1c1   :  { %v194_v32 = vpop.f32.mrb[0].mxu1 }
 0x1c2   :  { %v195_v33 = vadd.f32 %v194_v32, %v145_v31  ;;  %v267_v34 = vpop.f32.mrb[1].mxu1 }
 0x1c3   :  { %v197_v36 = vpop.f32.mrb[2].mxu1 }
 0x1c4   :  { %v198_v37 = vadd.f32 %v197_v36, %v150_v35  ;;  %v268_v38 = vpop.f32.mrb[3].mxu1  ;;  %v201_v39 = vmax.f32 %v195_v33, 0.0 }
 0x1c6   :  { %v202_v40 = vmax.f32 %v198_v37, 0.0 }
 0x1c8   :  { %v244_v41 = vpack.c.bf16 %v202_v40, %v201_v39 }
 0x1ca   :  { %245 = vst [vmem:[#allocation2] sm:$0xff] %v244_v41  }
 0x1cb   :  { %293 = shalt.err (!%p290_p4)
}
 0x1cc   :  { %s294_s15 = scalar_lea.hbm %s395_s5, 128 }
 0x1cd   :  { %p295_p5 = scmp.ne.s32.totalorder %s395_s5, %s294_s15  ;;  %p298_p6 = scmp.lt.u32.totalorder %s294_s15, %s395_s5 }
 0x1cf   :  { %p300_p7 = pnand %p298_p6, %p295_p5 }
 0x1d1   :  { %303 = shalt.err (!%p300_p7)
}
 0x1d2   :  { %s310_s20 = smov 64   ;;  %s311_s21 = smov 4  }
 0x1d3   :  { %224 = dma.vmem_to_hbm [thread:$0]  %s219_s12, 128, %s395_s5, [#allocation3], %s310_s20, %s310_s20, %s311_s21  }
 0x1d4   :  { %304 = dma.done.wait [#allocation3], 128  }
 0x1d5   :  { %305 = vsyncadd [#allocation3], 4294967168 }
 0x1d6   :  { %228 = vsyncpa [#allocation3], 1 }

</bundles_post_ra>
